<compile_context>
chip_gen: v7x
topology: tpu7x:2x2x1
jax: 0.10.0
libtpu: 0.0.40
codegen_flags: <defaults>
</compile_context>

<pallas_src>
import math
import functools

import jax
import jax.numpy as jnp
from jax.experimental import pallas as pl
from jax.experimental.pallas import tpu as pltpu


def _fourier_kernel(t_ref, freqs_ref, out_ref, *, half, odd, block_b):
    """Compute cos/sin Fourier features for one batch tile.

    t_ref:     (B_pad, 1)      float32, resident (same block every grid step)
    freqs_ref: (1, half)       float32, resident
    out_ref:   (block_b, dim)  float32 tile of embeddings
    """
    i = pl.program_id(0)
    row0 = pl.multiple_of(i * block_b, block_b)
    t = t_ref[pl.ds(row0, block_b), :]          # (block_b, 1)
    args = t * freqs_ref[...]                   # (block_b, half)
    out_ref[:, :half] = jnp.cos(args)
    out_ref[:, half:2 * half] = jnp.sin(args)
    if odd:
        out_ref[:, 2 * half:] = jnp.zeros((block_b, 1), jnp.float32)


def _round_up(x, m):
    return ((x + m - 1) // m) * m


def _pick_block_b(b, dim_out, block_b):
    if block_b is None:
        # Budget ~16 MiB for the double-buffered f32 output tiles so the kernel
        # stays well under the 32 MiB default-scoped VMEM on v7x (and has huge
        # headroom on v5e/v6e with 128 MiB).
        budget = 16 * 1024 * 1024
        cap = max(8, budget // (2 * 4 * max(dim_out, 1)))
        block_b = min(2048, cap)
    block_b = max(8, (block_b // 8) * 8)
    block_b = min(block_b, _round_up(b, 8))
    return block_b


def fourier_embeddings(t, dim, max_period=10000, *, block_b=None):
    """Pallas implementation of mlfab.fourier_embeddings(t, dim, max_period)."""
    assert t.ndim == 1, "t is a vector of continuous timesteps"
    b = t.shape[0]
    half = dim // 2
    odd = bool(dim % 2)
    if half == 0:
        # dim == 1 (or 0): the reference is all zeros.
        return jnp.zeros((b, dim), jnp.float32)
    dim_out = 2 * half + (1 if odd else 0)      # == dim

    # Frequencies precomputed once (tiny) and kept resident in VMEM.
    idxs = jnp.arange(half, dtype=jnp.float32)
    freqs = jnp.exp(-math.log(max_period) * idxs / half).reshape(1, half)

    bb = _pick_block_b(b, dim_out, block_b)
    grid = pl.cdiv(b, bb)
    b_pad = grid * bb

    t2 = t.astype(jnp.float32).reshape(b, 1)
    if b_pad != b:
        # Pad so in-kernel pl.ds row reads never go out of bounds; the output
        # tail rows are masked by Pallas on writeback.
        t2 = jnp.pad(t2, ((0, b_pad - b), (0, 0)))

    kernel = functools.partial(_fourier_kernel, half=half, odd=odd, block_b=bb)
    out = pl.pallas_call(
        kernel,
        out_shape=jax.ShapeDtypeStruct((b, dim_out), jnp.float32),
        grid=(grid,),
        in_specs=[
            pl.BlockSpec((b_pad, 1), lambda i: (0, 0)),   # t: resident
            pl.BlockSpec((1, half), lambda i: (0, 0)),    # freqs: resident
        ],
        out_specs=pl.BlockSpec((bb, dim_out), lambda i: (i, 0)),
        compiler_params=pltpu.CompilerParams(
            dimension_semantics=("parallel",)),
    )(t2, freqs)
    # TODO(synk): for dim with half < 128 the stores are lane-masked; padding the
    # output to a 128-multiple and slicing would trade that for extra HBM traffic.
    return out


def _reference(t, dim, max_period=10000):
    """Pure-JAX reference matching the PyTorch code exactly."""
    half = dim // 2
    idxs = jnp.arange(half, dtype=jnp.float32)
    freqs = jnp.exp(-math.log(max_period) * idxs / half)
    args = t[:, None].astype(jnp.float32) * freqs[None]
    emb = jnp.concatenate([jnp.cos(args), jnp.sin(args)], axis=-1)
    if dim % 2:
        emb = jnp.concatenate([emb, jnp.zeros_like(emb[:, :1])], axis=-1)
    return emb


if __name__ == "__main__":
    key = jax.random.PRNGKey(0)

    # Test 1: even dim, single tile.
    B, DIM, MAX_PERIOD = 8, 32, 10000
    t = jax.random.uniform(key, (B,), dtype=jnp.float32) * 1000.0
    out = jax.block_until_ready(fourier_embeddings(t, DIM, MAX_PERIOD))
    ref = _reference(t, DIM, MAX_PERIOD)
    assert out.shape == (B, DIM), out.shape
    assert out.dtype == jnp.float32
    assert jnp.allclose(out, ref, atol=1e-5, rtol=1e-5), float(jnp.abs(out - ref).max())

    # Test 2: odd dim, multiple tiles with a ragged tail (B not divisible by block_b).
    B2, DIM2 = 20, 33
    t2 = jax.random.uniform(jax.random.PRNGKey(1), (B2,), dtype=jnp.float32) * 1000.0
    out2 = jax.block_until_ready(fourier_embeddings(t2, DIM2, MAX_PERIOD, block_b=8))
    ref2 = _reference(t2, DIM2, MAX_PERIOD)
    assert out2.shape == (B2, DIM2), out2.shape
    assert jnp.allclose(out2, ref2, atol=1e-5, rtol=1e-5), float(jnp.abs(out2 - ref2).max())

    print("KERNEL_OK")
</pallas_src>

<mosaic_0001>
module attributes {stable_mosaic.version = 11 : i64} {
  func.func @_fourier_kernel(%arg0: i32, %arg1: memref<8x1xf32, #tpu.memory_space<vmem>>, %arg2: memref<1x16xf32, #tpu.memory_space<vmem>>, %arg3: memref<8x32xf32, #tpu.memory_space<vmem>>) attributes {dimension_semantics = [#tpu.dimension_semantics<parallel>], iteration_bounds = array<i64: 1>, scalar_prefetch = 0 : i64, scratch_operands = 0 : i64, tpu.core_type = #tpu.core_type<tc>, window_params = [{pipeline_mode = #tpu.pipeline_mode<synchronous>, transform_indices = @transform_0, window_bounds = array<i64: 8, 1>}, {pipeline_mode = #tpu.pipeline_mode<synchronous>, transform_indices = @transform_1, window_bounds = array<i64: 1, 16>}, {transform_indices = @transform_2, window_bounds = array<i64: 8, 32>}]} {
    %c8_i32 = arith.constant 8 : i32
    %0 = arith.muli %arg0, %c8_i32 : i32
    %1 = tpu.assume_multiple %0, 8 : i32
    %2 = arith.index_cast %1 : i32 to index
    %c0 = arith.constant 0 : index
    %3 = vector.load %arg1[%2, %c0] : memref<8x1xf32, #tpu.memory_space<vmem>>, vector<8x1xf32>
    %c0_0 = arith.constant 0 : index
    %c0_1 = arith.constant 0 : index
    %4 = vector.load %arg2[%c0_0, %c0_1] : memref<1x16xf32, #tpu.memory_space<vmem>>, vector<1x16xf32>
    %5 = vector.broadcast %3 : vector<8x1xf32> to vector<8x16xf32>
    %6 = vector.broadcast %4 : vector<1x16xf32> to vector<8x16xf32>
    %7 = arith.mulf %5, %6 : vector<8x16xf32>
    %8 = math.cos %7 : vector<8x16xf32>
    %c0_2 = arith.constant 0 : index
    %c0_3 = arith.constant 0 : index
    %9 = vector.load %arg3[%c0_2, %c0_3] : memref<8x32xf32, #tpu.memory_space<vmem>>, vector<8x16xf32>
    tpu.vector_store %arg3[%c0_2, %c0_3], %8 {strides = array<i32>} : memref<8x32xf32, #tpu.memory_space<vmem>>, vector<8x16xf32>,
    %10 = math.sin %7 : vector<8x16xf32>
    %c0_4 = arith.constant 0 : index
    %c16 = arith.constant 16 : index
    %11 = vector.load %arg3[%c0_4, %c16] : memref<8x32xf32, #tpu.memory_space<vmem>>, vector<8x16xf32>
    tpu.vector_store %arg3[%c0_4, %c16], %10 {strides = array<i32>} : memref<8x32xf32, #tpu.memory_space<vmem>>, vector<8x16xf32>,
    return
  }
  func.func @transform_0(%arg0: i32) -> (i32, i32) {
    %c0_i32 = arith.constant 0 : i32
    %c0_i32_0 = arith.constant 0 : i32
    %c0_i32_1 = arith.constant 0 : i32
    return %c0_i32, %c0_i32_0 : i32, i32
  }
  func.func @transform_1(%arg0: i32) -> (i32, i32) {
    %c0_i32 = arith.constant 0 : i32
    %c0_i32_0 = arith.constant 0 : i32
    %c0_i32_1 = arith.constant 0 : i32
    return %c0_i32, %c0_i32_0 : i32, i32
  }
  func.func @transform_2(%arg0: i32) -> (i32, i32) {
    %c0_i32 = arith.constant 0 : i32
    %c0_i32_0 = arith.constant 0 : i32
    return %arg0, %c0_i32 : i32, i32
  }
}

</mosaic_0001>

<bundles_post_ra>
// kernel: tpu_custom_call.1
= control target key start
LH: loop header
LB: loop body
LE: loop exit
PB: predicated region body
PF: predicated region fallthrough
CT: control target
= control target key end

     0   :  { %v308_v1 = vmov 0   ;;  %s372_s0 = inlined_call_operand.vmem [shape: f32[8,1], index: 0, kind: input, shape index: {}]   ;;  %s373_s1 = inlined_call_operand.vmem [shape: f32[1,16], index: 1, kind: input, shape index: {}]   ;;  %s374_s2 = inlined_call_operand.hbm [shape: f32[8,32], index: 2, kind: output, shape index: {}]  }
   0x1   :  { %v14_v0 = vld [vmem:[%s372_s0] sm:$0xff]  ;;  %279 = vset.pattern.permute.xlu0 %v308_v1 }
   0x2   :  { %18 = vperm.xlu0 %279, %v14_v0  }
   0x3   :  { %7 = vsyncpa [#allocation3], 0  ;;  %v257_v2 = vld [vmem:[%s373_s1] ss:$0 sm:$0xff]  ;;  %v309_v15 = vmov 683565275  }
   0x4   :  { %v310_v17 = vmov 2475754826   ;;  %v311_v20 = vmov 2131351028   ;;  %v312_v23 = vmov 2102212464  }
   0x5   :  { %v313_v26 = vmov 920167782   ;;  %v314_v29 = vmov 1326507024   ;;  %vm131_vm11 = vcmask 130048   ;;  %s315_s0 = smov 16  }
   0x6   :  { %s316_s1 = smov [#allocation2]  }
   0x7   :  { %s249_s13 = sshll.u32 %s316_s1, 4  ;;  %s250_s13 = int_to_ptr.vmem [resolvable:$true] %s249_s13 }
   0x8   :  { %s284_s14 = scalar_lea.vmem %s250_s13, 128  ;;  %p289_p1 = scmp.lt.s32.totalorder %s250_s13, %s250_s13 }
   0x9   :  { %p285_p0 = scmp.ne.s32.totalorder %s250_s13, %s284_s14  ;;  %p290_p2 = scmp.lt.s32.totalorder %s284_s14, %s284_s14 }
   0xb   :  { %p291_p3 = por %p290_p2, %p289_p1 }
   0xd   :  { %p292_p4 = pnand %p291_p3, %p285_p0 }
  0x81   :  { %v19_v3 = vpop.permute.xlu0 %18 }
  0x82   :  { %v338_v4 = vmul.f32 %v257_v2, %v19_v3 }
  0x84   :  { %v31_v5 = vand.u32 2139095040, %v338_v4  ;;  %v28_v9 = vand.u32 2147483647, %v338_v4  ;;  %vm30_vm7 = vcmp.lt.s32.totalorder %v338_v4, 0 }
  0x86   :  { %v32_v6 = vshrl.u32 %v31_v5, 23  ;;  %v35_v12 = vand.u32 8388607, %v28_v9  ;;  %vm29_vm8 = vcmp.le.f32.partialorder %v28_v9, 0.7853982 }
  0x88   :  { %v258_v7 = vadd.s32 4294967169, %v32_v6  ;;  %v36_v31 = vor.u32 8388608, %v35_v12 }
  0x8a   :  { %v38_v8 = vadd.s32 1, %v258_v7  ;;  %v76_v45 = vshll.u32 %v36_v31, 8 }
  0x8c   :  { %vm39_vm0 = vcmp.gt.s32.totalorder %v38_v8, 0 }
  0x8d   :  { %v40_v10 = vsel %vm39_vm0, %v38_v8, 0  ;;  %vm120_vm0 = vweird.f32 %v338_v4 }
  0x8e   :  { %v42_v11 = vand.u32 31, %v40_v10  ;;  %v41_v14 = vshrl.u32 %v40_v10, 5 }
  0x90   :  { %v43_v13 = vsub.s32 32, %v42_v11  ;;  %v45_v16 = vshll.u32 %v309_v15, %v42_v11  ;;  %v48_v18 = vshll.u32 %v310_v17, %v42_v11  ;;  %v51_v22 = vshll.u32 %v311_v20, %v42_v11 }
  0x91   :  { %v54_v25 = vshll.u32 %v312_v23, %v42_v11  ;;  %v57_v28 = vshll.u32 %v313_v26, %v42_v11  ;;  %vm60_vm1 = vcmp.lt.s32.totalorder %v41_v14, 1  ;;  %vm63_vm2 = vcmp.lt.s32.totalorder %v41_v14, 4 }
  0x92   :  { %v46_v19 = vshrl.u32 %v310_v17, %v43_v13  ;;  %v49_v21 = vshrl.u32 %v311_v20, %v43_v13  ;;  %v52_v24 = vshrl.u32 %v312_v23, %v43_v13  ;;  %v55_v27 = vshrl.u32 %v313_v26, %v43_v13 }
  0x93   :  { %v58_v30 = vshrl.u32 %v314_v29, %v43_v13  ;;  %v44_v40 = vshrl.u32 %v309_v15, %v43_v13  ;;  %vm62_vm3 = vcmp.lt.s32.totalorder %v41_v14, 3  ;;  %vm61_vm4 = vcmp.lt.s32.totalorder %v41_v14, 2 }
  0x94   :  { %v47_v32 = vor.u32 %v46_v19, %v45_v16  ;;  %v50_v33 = vor.u32 %v49_v21, %v48_v18  ;;  %v53_v34 = vor.u32 %v52_v24, %v51_v22  ;;  %v56_v35 = vor.u32 %v55_v27, %v54_v25 }
  0x95   :  { %v59_v36 = vor.u32 %v58_v30, %v57_v28 }
  0x96   :  { %v65_v37 = vsel %vm63_vm2, %v53_v34, 2102212464  ;;  %v68_v38 = vsel %vm60_vm1, %v47_v32, %v50_v33  ;;  %v72_v39 = vsel %vm60_vm1, %v50_v33, %v53_v34  ;;  %v69_v41 = vsel %vm63_vm2, %v56_v35, 920167782 }
  0x97   :  { %v73_v42 = vsel %vm63_vm2, %v59_v36, 1326507024  ;;  %v70_v43 = vsel %vm62_vm3, %v53_v34, %v69_v41  ;;  %v64_v46 = vsel %vm60_vm1, %v44_v40, %v47_v32  ;;  %v66_v47 = vsel %vm62_vm3, %v50_v33, %v65_v37 }
  0x98   :  { %v74_v44 = vsel %vm62_vm3, %v56_v35, %v73_v42  ;;  %v71_v48 = vsel %vm61_vm4, %v68_v38, %v70_v43  ;;  %v67_v54 = vsel %vm61_vm4, %v64_v46, %v66_v47  ;;  %vm241_vm1 = vcmask 261248  }
  0x99   :  { %v75_v49 = vsel %vm61_vm4, %v72_v39, %v74_v44  ;;  %v347_v52 = vmul.u32.u64.low %v76_v45, %v71_v48  ;;  %v348_v53 = vmul.u32.u64.high %v76_v45, %v71_v48, %v347_v52  ;;  %v83_v56 = vmul.u32 %v76_v45, %v67_v54 }
  0x9a   :  { %v344_v50 = vmul.u32.u64.low %v76_v45, %v75_v49  ;;  %v345_v51 = vmul.u32.u64.high %v76_v45, %v75_v49, %v344_v50 }
  0x9b   :  { %v86_v55 = vadd.s32 1, %v348_v53 }
  0x9c   :  { %vm85_vm5 = vc.u32 %v345_v51, %v347_v52  ;;  %v84_v5 = vadd.s32 %v347_v52, %v345_v51 }
  0x9d   :  { %v87_v57 = vsel %vm85_vm5, %v86_v55, %v348_v53 }
  0x9e   :  { %v88_v58 = vadd.s32 %v87_v57, %v83_v56 }
  0xa0   :  { %v89_v59 = vadd.s32 536870912, %v88_v58 }
  0xa2   :  { %v90_v60 = vshrl.u32 %v89_v59, 30 }
  0xa4   :  { %v91_v61 = vshll.u32 %v90_v60, 30  ;;  %v114_v18 = vsub.s32 4, %v90_v60 }
  0xa6   :  { %v92_v62 = vsub.s32 %v88_v58, %v91_v61  ;;  %v115_v21 = vsel %vm30_vm7, %v114_v18, %v90_v60 }
  0xa7   :  { %v117_v23 = vsel %vm29_vm8, 0, %v115_v21 }
  0xa8   :  { %v94_v63 = vsub.s32 0, %v92_v62  ;;  %v226_v24 = vadd.s32 3, %v117_v23  ;;  %v121_v25 = vand.u32 3, %v117_v23 }
  0xaa   :  { %v259_v0 = vmin.u32 %v94_v63, %v92_v62  ;;  %v227_v26 = vand.u32 3, %v226_v24  ;;  %vm126_vm9 = vcmp.eq.s32.totalorder %v121_v25, 2  ;;  %vm123_vm12 = vcmp.eq.s32.totalorder %v121_v25, 0 }
  0xab   :  { %vm122_vm14 = vcmp.lt.s32.totalorder %v121_v25, 2 }
  0xac   :  { %v96_v1 = vclz %v259_v0  ;;  %vm232_vm10 = vcmp.eq.s32.totalorder %v227_v26, 2  ;;  %vm229_vm13 = vcmp.eq.s32.totalorder %v227_v26, 0  ;;  %vm228_vm15 = vcmp.lt.s32.totalorder %v227_v26, 2 }
  0xae   :  { %v260_v2 = vadd.s32 4294967294, %v96_v1 }
  0xb0   :  { %vm261_vm6 = vcmp.lt.s32.totalorder %v260_v2, 0 }
  0xb1   :  { %v99_v3 = vsel %vm261_vm6, 0, %v260_v2 }
  0xb2   :  { %v100_v6 = vsub.s32 32, %v99_v3  ;;  %v104_v7 = vsub.s32 4294967266, %v99_v3  ;;  %v101_v8 = vshll.u32 %v92_v62, %v99_v3 }
  0xb4   :  { %v102_v10 = vshrl.u32 %v84_v5, %v100_v6  ;;  %v105_v11 = vadd.s32 127, %v104_v7 }
  0xb6   :  { %v103_v12 = vor.u32 %v102_v10, %v101_v8  ;;  %v106_v13 = vshll.u32 %v105_v11, 23 }
  0xb8   :  { %v107_v14 = vor.u32 4788187, %v106_v13  ;;  %v110_v16 = vcvt.s32.f32 %v103_v12 }
  0xba   :  { %v108_v15 = vand.u32 2147483647, %v107_v14 }
  0xbc   :  { %v111_v17 = vmul.f32 %v110_v16, %v108_v15 }
  0xbe   :  { %v112_v19 = vxor.u32 2147483648, %v111_v17 }
  0xc0   :  { %v113_v20 = vsel %vm30_vm7, %v112_v19, %v111_v17 }
  0xc1   :  { %v116_v22 = vsel %vm29_vm8, %v338_v4, %v113_v20 }
  0xc2   :  { %280 = vcosq.f32 %v116_v22 }
  0xc3   :  { %282 = vsinq.f32 %v116_v22 }
  0xcc   :  { %v281_v27 = vpop.eup %280 }
  0xcd   :  { %v283_v28 = vpop.eup %282  ;;  %v127_v29 = vxor.u32 2147483648, %v281_v27 }
  0xce   :  { %v124_v30 = vxor.u32 2147483648, %v283_v28 }
  0xcf   :  { %v234_v31 = vsel %vm232_vm10, %v127_v29, %v283_v28  ;;  %v128_v9 = vsel %vm126_vm9, %v127_v29, %v283_v28 }
  0xd0   :  { %v231_v32 = vsel %vm229_vm13, %v281_v27, %v124_v30  ;;  %v125_v33 = vsel %vm123_vm12, %v281_v27, %v124_v30 }
  0xd1   :  { %v235_v34 = vsel %vm228_vm15, %v231_v32, %v234_v31  ;;  %v129_v35 = vsel %vm122_vm14, %v125_v33, %v128_v9 }
  0xd2   :  { %v236_v36 = vsel %vm120_vm0, nan, %v235_v34  ;;  %v130_v37 = vsel %vm120_vm0, nan, %v129_v35 }
  0xd3   :  { %238 = vrot.lane.b32.xlu0 %v236_v36, %s315_s0  ;;  %132 = vst.msk [vmem:[#allocation2] sm:$0xff] %vm131_vm11, %v130_v37 }
 0x145   :  { %v239_v38 = vpop.permute.xlu0 %238 }
 0x146   :  { %242 = vst.msk [vmem:[#allocation2] sm:$0xff] %vm241_vm1, %v239_v38 }
 0x147   :  { %295 = shalt.err (!%p292_p4)
}
 0x148   :  { %s296_s17 = scalar_lea.hbm %s374_s2, 128 }
 0x149   :  { %p297_p5 = scmp.ne.s32.totalorder %s374_s2, %s296_s17  ;;  %p300_p6 = scmp.lt.u32.totalorder %s296_s17, %s374_s2 }
 0x14b   :  { %p302_p7 = pnand %p300_p6, %p297_p5 }
 0x14d   :  { %305 = shalt.err (!%p302_p7)
}
 0x14e   :  { %252 = dma.vmem_to_hbm [thread:$0]  %s250_s13, 128, %s374_s2, [#allocation3]  }
 0x14f   :  { %306 = dma.done.wait [#allocation3], 128  }
 0x150   :  { %307 = vsyncadd [#allocation3], 4294967168 }
 0x151   :  { %256 = vsyncpa [#allocation3], 1 }

</bundles_post_ra>
